<compile_context>
chip_gen: v5e
topology: v5e:2x2
jax: 0.10.0
libtpu: 0.0.40
codegen_flags: <defaults>
</compile_context>

<pallas_src>
import numpy as np
import jax
import jax.numpy as jnp
from jax.experimental import pallas as pl
from jax.experimental.pallas import tpu as pltpu


# ----------------------------------------------------------------------------
# Pallas kernel: single grid step, whole batch resident in VMEM, lane-dense.
# ----------------------------------------------------------------------------
def _bottleneck_kernel(x_ref,                     # (N, H, W*Cin) f32
                       w1_ref, t1_ref,            # conv1 block-diag + bn1 shift
                       w2_ref, t2_ref,            # conv2 banded (3,...) + bn2 shift
                       w3_ref, t3_ref,            # conv3 block-diag + bn3 shift
                       o_ref):                    # (N, H, W*C2) f32
    N, H, WCin = x_ref.shape
    WC0 = w1_ref.shape[1]
    WC2 = w3_ref.shape[1]
    NH = N * H

    # Read input once; (N,H,W*Cin)->(N*H,W*Cin) only merges leading dims.
    x = x_ref[...]
    x2d = x.reshape(NH, WCin)
    x_bf = x2d.astype(jnp.bfloat16)

    # --- conv1 (1x1 as block-diagonal matmul) + bn1 (scale pre-folded) + relu
    y1 = jnp.dot(x_bf, w1_ref[...], preferred_element_type=jnp.float32)
    y1 = jnp.maximum(y1 + t1_ref[...], 0.0)                 # (NH, WC0) f32
    y1b = y1.astype(jnp.bfloat16)                            # cast once

    # --- conv2 (3x3, pad 1, 'adapt' folded into the center tap) as three
    #     banded matmuls; row shift done per image with a zero bf16 row -------
    y1_3d = y1b.reshape(N, H, WC0)
    zrow = jnp.zeros((N, 1, WC0), jnp.bfloat16)
    y_up = jnp.concatenate([zrow, y1_3d[:, :H - 1, :]], axis=1).reshape(NH, WC0)
    y_dn = jnp.concatenate([y1_3d[:, 1:, :], zrow], axis=1).reshape(NH, WC0)

    acc = jnp.dot(y_up, w2_ref[0], preferred_element_type=jnp.float32)   # dy=0
    acc += jnp.dot(y1b, w2_ref[1], preferred_element_type=jnp.float32)   # dy=1
    acc += jnp.dot(y_dn, w2_ref[2], preferred_element_type=jnp.float32)  # dy=2

    # --- bn2 (scale pre-folded; conv2/adapt biases folded into t2) + relu ----
    y2 = jnp.maximum(acc + t2_ref[...], 0.0)                 # (NH, WC1) f32

    # --- conv3 (1x1 block-diagonal) + bn3 + residual + relu ------------------
    y3 = jnp.dot(y2.astype(jnp.bfloat16), w3_ref[...],
                 preferred_element_type=jnp.float32)
    y3 = y3 + t3_ref[...] + x2d                               # Cin == C2
    o_ref[...] = jnp.maximum(y3, 0.0).reshape(N, H, WC2)      # lane-dense store


# ----------------------------------------------------------------------------
# Wrapper
# ----------------------------------------------------------------------------
def bottleneck_forward(x_nhwc, p):
    N, H, W, Cin = x_nhwc.shape
    WCin = W * Cin
    WC0 = p["w1"].shape[1]
    WC1 = p["w3"].shape[0]
    WC2 = p["w3"].shape[1]
    assert WCin == WC2, "residual add requires inplanes == chans * expansion"
    C0, C1, C2 = WC0 // W, WC1 // W, WC2 // W

    x_flat = x_nhwc.reshape(N, H, WCin)   # lane-dense HBM-facing layout

    flops = 2 * N * H * W * (Cin * C0 + 9 * C0 * C1 + C1 * C2)
    bytes_accessed = (4 * N * H * W * (Cin + C2)                       # x, out
                      + 2 * (WCin * WC0 + 3 * WC0 * WC1 + WC1 * WC2)   # bf16 w
                      + 4 * (WC0 + WC1 + WC2))                         # shifts

    def full_spec(shape):
        nd = len(shape)
        return pl.BlockSpec(shape, lambda i, _nd=nd: (0,) * _nd)

    grid_spec = pltpu.PrefetchScalarGridSpec(
        num_scalar_prefetch=0,
        grid=(1,),                          # single step: whole batch at once
        in_specs=[
            full_spec((N, H, WCin)),
            full_spec((WCin, WC0)), full_spec((1, WC0)),
            full_spec((3, WC0, WC1)), full_spec((1, WC1)),
            full_spec((WC1, WC2)), full_spec((1, WC2)),
        ],
        out_specs=full_spec((N, H, WC2)),
    )

    out_flat = pl.pallas_call(
        _bottleneck_kernel,
        out_shape=jax.ShapeDtypeStruct((N, H, WC2), jnp.float32),
        grid_spec=grid_spec,
        compiler_params=pltpu.CompilerParams(
            dimension_semantics=("arbitrary",),
            vmem_limit_bytes=8 * 1024 * 1024),
        cost_estimate=pl.CostEstimate(flops=flops, transcendentals=0,
                                      bytes_accessed=bytes_accessed),
    )(x_flat, p["w1"], p["t1"], p["w2"], p["t2"], p["w3"], p["t3"])

    return out_flat.reshape(N, H, W, C2)


# ----------------------------------------------------------------------------
# Deterministic synthetic parameters.
#   * BN (inference) folded to per-channel scale/shift (eps=1e-5); scales are
#     folded into the conv weight columns, conv biases into the shifts, and
#     the 'adapt' 1x1 weight/bias into the 3x3 center tap / bn2 shift.
#   * Kernel packings: block-diagonal conv1/conv3 and banded conv2 weights in
#     bf16 (built from the same scaled f32 weights -> bit-identical values),
#     shifts tiled to (1, W*C) lanes.  Reference packings: per-tap bf16.
# ----------------------------------------------------------------------------
def init_params(key, inplanes, chans, width, expansion=4):
    C0 = C1 = chans
    C2 = chans * expansion
    W = width
    eps = 1e-5
    ks = jax.random.split(key, 20)

    def u(k, shape, lo=-0.2, hi=0.2):
        return jax.random.uniform(k, shape, jnp.float32, lo, hi)

    # conv weights / biases (stored as (Cin, Cout) matrices)
    w1, b1 = u(ks[0], (inplanes, C0)), u(ks[1], (C0,))
    wa, ba = u(ks[2], (C0, C1), 0.0, 1.0), u(ks[3], (C1,))   # nn.init.uniform_
    w2, b2 = u(ks[4], (3, 3, C0, C1)), u(ks[5], (C1,))
    w3, b3 = u(ks[6], (C1, C2)), u(ks[7], (C2,))

    # BatchNorm (inference) params
    def bn(i, c):
        gamma = 1.0 + u(ks[i], (c,), -0.1, 0.1)
        beta = u(ks[i + 1], (c,), -0.1, 0.1)
        mean = u(ks[i + 2], (c,), -0.1, 0.1)
        var = 1.0 + u(ks[i + 3], (c,), -0.1, 0.1)
        return gamma, beta, mean, var

    g1, be1, m1, v1 = bn(8, C0)
    g2, be2, m2, v2 = bn(12, C1)
    g3, be3, m3, v3 = bn(16, C2)

    s1 = g1 / jnp.sqrt(v1 + eps)
    t1 = be1 + (b1 - m1) * s1
    s2 = g2 / jnp.sqrt(v2 + eps)
    t2 = be2 + (b2 + ba - m2) * s2          # adapt & conv2 biases folded
    s3 = g3 / jnp.sqrt(v3 + eps)
    t3 = be3 + (b3 - m3) * s3

    # fold adapt (1x1) into the 3x3 center tap; fold BN scales into weights
    w2 = w2.at[1, 1].add(wa)
    w1s = w1 * s1[None, :]
    w2s = w2 * s2[None, None, None, :]
    w3s = w3 * s3[None, :]

    bf = jnp.bfloat16

    # --- reference (per-tap) packings ---------------------------------------
    ref_p = dict(w1=w1s.astype(bf), w2=w2s.astype(bf), w3=w3s.astype(bf),
                 t1=t1, t2=t2, t3=t3)

    # --- kernel packings (lane-dense) ---------------------------------------
    w1_np = np.asarray(w1s)
    w2_np = np.asarray(w2s)
    w3_np = np.asarray(w3s)

    w1_bd = np.zeros((W * inplanes, W * C0), np.float32)      # block-diag
    for w in range(W):
        w1_bd[w * inplanes:(w + 1) * inplanes, w * C0:(w + 1) * C0] = w1_np

    w2_band = np.zeros((3, W * C0, W * C1), np.float32)       # banded per dy
    for dy in range(3):
        for dx in range(3):
            for wo in range(W):
                wi = wo + dx - 1
                if 0 <= wi < W:
                    w2_band[dy, wi * C0:(wi + 1) * C0,
                            wo * C1:(wo + 1) * C1] = w2_np[dy, dx]

    w3_bd = np.zeros((W * C1, W * C2), np.float32)            # block-diag
    for w in range(W):
        w3_bd[w * C1:(w + 1) * C1, w * C2:(w + 1) * C2] = w3_np

    kern_p = dict(
        w1=jnp.asarray(w1_bd).astype(bf), t1=jnp.tile(t1, W).reshape(1, W * C0),
        w2=jnp.asarray(w2_band).astype(bf), t2=jnp.tile(t2, W).reshape(1, W * C1),
        w3=jnp.asarray(w3_bd).astype(bf), t3=jnp.tile(t3, W).reshape(1, W * C2))

    return kern_p, ref_p


# ----------------------------------------------------------------------------
# Pure-JAX reference (same math, same bf16 rounding points) for correctness
# ----------------------------------------------------------------------------
def bottleneck_ref(x, rp):
    N, H, W, Cin = x.shape
    C1 = rp["w2"].shape[-1]
    bf16, f32 = jnp.bfloat16, jnp.float32

    y1 = jnp.einsum("nhwc,cd->nhwd", x.astype(bf16), rp["w1"],
                    preferred_element_type=f32)
    y1 = jnp.maximum(y1 + rp["t1"], 0.0)
    y1b = y1.astype(bf16)

    yp = jnp.pad(y1b, ((0, 0), (1, 1), (1, 1), (0, 0)))
    acc = jnp.zeros((N, H, W, C1), f32)
    for dy in range(3):
        for dx in range(3):
            acc = acc + jnp.einsum("nhwc,cd->nhwd",
                                   yp[:, dy:dy + H, dx:dx + W, :],
                                   rp["w2"][dy, dx],
                                   preferred_element_type=f32)
    y2 = jnp.maximum(acc + rp["t2"], 0.0)

    y3 = jnp.einsum("nhwc,cd->nhwd", y2.astype(bf16), rp["w3"],
                    preferred_element_type=f32)
    y3 = y3 + rp["t3"] + x
    return jnp.maximum(y3, 0.0)


if __name__ == "__main__":
    # Bottleneck(inplanes=32, chans=8, expansion=4, stride=1, downsample=False)
    # -> residual add requires inplanes == chans * expansion.
    N, H, W = 2, 16, 16
    chans, expansion = 8, 4
    inplanes = chans * expansion

    key = jax.random.PRNGKey(0)
    kx, kp = jax.random.split(key)
    x_nhwc = jax.random.normal(kx, (N, H, W, inplanes), jnp.float32)
    kern_p, ref_p = init_params(kp, inplanes, chans, W, expansion)

    out = jax.block_until_ready(bottleneck_forward(x_nhwc, kern_p))
    ref = jax.block_until_ready(bottleneck_ref(x_nhwc, ref_p))
    np.testing.assert_allclose(np.asarray(out), np.asarray(ref),
                               rtol=2e-3, atol=2e-3)
    print("KERNEL_OK")
</pallas_src>

<mosaic_0001>
module attributes {stable_mosaic.version = 11 : i64} {
  func.func @_bottleneck_kernel(%arg0: i32, %arg1: memref<2x16x512xf32, #tpu.memory_space<vmem>>, %arg2: memref<512x128xbf16, #tpu.memory_space<vmem>>, %arg3: memref<1x128xf32, #tpu.memory_space<vmem>>, %arg4: memref<3x128x128xbf16, #tpu.memory_space<vmem>>, %arg5: memref<1x128xf32, #tpu.memory_space<vmem>>, %arg6: memref<128x512xbf16, #tpu.memory_space<vmem>>, %arg7: memref<1x512xf32, #tpu.memory_space<vmem>>, %arg8: memref<2x16x512xf32, #tpu.memory_space<vmem>>) attributes {dimension_semantics = [#tpu.dimension_semantics<arbitrary>], iteration_bounds = array<i64: 1>, scalar_prefetch = 0 : i64, scratch_operands = 0 : i64, tpu.core_type = #tpu.core_type<tc>, window_params = [{pipeline_mode = #tpu.pipeline_mode<synchronous>, transform_indices = @transform_0, window_bounds = array<i64: 2, 16, 512>}, {pipeline_mode = #tpu.pipeline_mode<synchronous>, transform_indices = @transform_1, window_bounds = array<i64: 512, 128>}, {pipeline_mode = #tpu.pipeline_mode<synchronous>, transform_indices = @transform_2, window_bounds = array<i64: 1, 128>}, {pipeline_mode = #tpu.pipeline_mode<synchronous>, transform_indices = @transform_3, window_bounds = array<i64: 3, 128, 128>}, {pipeline_mode = #tpu.pipeline_mode<synchronous>, transform_indices = @transform_4, window_bounds = array<i64: 1, 128>}, {pipeline_mode = #tpu.pipeline_mode<synchronous>, transform_indices = @transform_5, window_bounds = array<i64: 128, 512>}, {pipeline_mode = #tpu.pipeline_mode<synchronous>, transform_indices = @transform_6, window_bounds = array<i64: 1, 512>}, {pipeline_mode = #tpu.pipeline_mode<synchronous>, transform_indices = @transform_7, window_bounds = array<i64: 2, 16, 512>}]} {
    %c0 = arith.constant 0 : index
    %c0_0 = arith.constant 0 : index
    %c0_1 = arith.constant 0 : index
    %0 = vector.load %arg1[%c0, %c0_0, %c0_1] : memref<2x16x512xf32, #tpu.memory_space<vmem>>, vector<2x16x512xf32>
    %1 = vector.shape_cast %0 : vector<2x16x512xf32> to vector<32x512xf32>
    %2 = arith.truncf %1 : vector<32x512xf32> to vector<32x512xbf16>
    %c0_2 = arith.constant 0 : index
    %c0_3 = arith.constant 0 : index
    %3 = vector.load %arg2[%c0_2, %c0_3] : memref<512x128xbf16, #tpu.memory_space<vmem>>, vector<512x128xbf16>
    %cst = arith.constant dense<0.000000e+00> : vector<32x128xf32>
    %4 = tpu.matmul %2, %3, %cst {dimension_numbers = #tpu.dot_dimension_numbers<[1], [0], [0], [1], [0, 0, 1, 1], [], []>} : vector<32x512xbf16>, vector<512x128xbf16>, vector<32x128xf32> -> vector<32x128xf32>
    %c0_4 = arith.constant 0 : index
    %c0_5 = arith.constant 0 : index
    %5 = vector.load %arg3[%c0_4, %c0_5] : memref<1x128xf32, #tpu.memory_space<vmem>>, vector<1x128xf32>
    %6 = vector.broadcast %5 : vector<1x128xf32> to vector<32x128xf32>
    %7 = arith.addf %4, %6 : vector<32x128xf32>
    %cst_6 = arith.constant 0.000000e+00 : f32
    %8 = vector.broadcast %cst_6 : f32 to vector<32x128xf32>
    %9 = arith.maximumf %7, %8 : vector<32x128xf32>
    %10 = arith.truncf %9 : vector<32x128xf32> to vector<32x128xbf16>
    %11 = vector.shape_cast %10 : vector<32x128xbf16> to vector<2x16x128xbf16>
    %cst_7 = arith.constant 0.000000e+00 : bf16
    %12 = vector.broadcast %cst_7 : bf16 to vector<2x1x128xbf16>
    %13 = vector.extract_strided_slice %11 {offsets = [0, 0, 0], sizes = [2, 15, 128], strides = [1, 1, 1]} : vector<2x16x128xbf16> to vector<2x15x128xbf16>
    %14 = tpu.concatenate %12, %13 in 1 : vector<2x1x128xbf16>, vector<2x15x128xbf16> -> vector<2x16x128xbf16>
    %15 = vector.shape_cast %14 : vector<2x16x128xbf16> to vector<32x128xbf16>
    %16 = vector.extract_strided_slice %11 {offsets = [0, 1, 0], sizes = [2, 15, 128], strides = [1, 1, 1]} : vector<2x16x128xbf16> to vector<2x15x128xbf16>
    %17 = tpu.concatenate %16, %12 in 1 : vector<2x15x128xbf16>, vector<2x1x128xbf16> -> vector<2x16x128xbf16>
    %18 = vector.shape_cast %17 : vector<2x16x128xbf16> to vector<32x128xbf16>
    %c0_8 = arith.constant 0 : index
    %c0_9 = arith.constant 0 : index
    %c0_10 = arith.constant 0 : index
    %19 = vector.load %arg4[%c0_8, %c0_9, %c0_10] : memref<3x128x128xbf16, #tpu.memory_space<vmem>>, vector<1x128x128xbf16>
    %20 = vector.shape_cast %19 : vector<1x128x128xbf16> to vector<128x128xbf16>
    %cst_11 = arith.constant dense<0.000000e+00> : vector<32x128xf32>
    %21 = tpu.matmul %15, %20, %cst_11 {dimension_numbers = #tpu.dot_dimension_numbers<[1], [0], [0], [1], [0, 0, 1, 1], [], []>} : vector<32x128xbf16>, vector<128x128xbf16>, vector<32x128xf32> -> vector<32x128xf32>
    %c1 = arith.constant 1 : index
    %c0_12 = arith.constant 0 : index
    %c0_13 = arith.constant 0 : index
    %22 = vector.load %arg4[%c1, %c0_12, %c0_13] : memref<3x128x128xbf16, #tpu.memory_space<vmem>>, vector<1x128x128xbf16>
    %23 = vector.shape_cast %22 : vector<1x128x128xbf16> to vector<128x128xbf16>
    %cst_14 = arith.constant dense<0.000000e+00> : vector<32x128xf32>
    %24 = tpu.matmul %10, %23, %cst_14 {dimension_numbers = #tpu.dot_dimension_numbers<[1], [0], [0], [1], [0, 0, 1, 1], [], []>} : vector<32x128xbf16>, vector<128x128xbf16>, vector<32x128xf32> -> vector<32x128xf32>
    %25 = arith.addf %21, %24 : vector<32x128xf32>
    %c2 = arith.constant 2 : index
    %c0_15 = arith.constant 0 : index
    %c0_16 = arith.constant 0 : index
    %26 = vector.load %arg4[%c2, %c0_15, %c0_16] : memref<3x128x128xbf16, #tpu.memory_space<vmem>>, vector<1x128x128xbf16>
    %27 = vector.shape_cast %26 : vector<1x128x128xbf16> to vector<128x128xbf16>
    %cst_17 = arith.constant dense<0.000000e+00> : vector<32x128xf32>
    %28 = tpu.matmul %18, %27, %cst_17 {dimension_numbers = #tpu.dot_dimension_numbers<[1], [0], [0], [1], [0, 0, 1, 1], [], []>} : vector<32x128xbf16>, vector<128x128xbf16>, vector<32x128xf32> -> vector<32x128xf32>
    %29 = arith.addf %25, %28 : vector<32x128xf32>
    %c0_18 = arith.constant 0 : index
    %c0_19 = arith.constant 0 : index
    %30 = vector.load %arg5[%c0_18, %c0_19] : memref<1x128xf32, #tpu.memory_space<vmem>>, vector<1x128xf32>
    %31 = vector.broadcast %30 : vector<1x128xf32> to vector<32x128xf32>
    %32 = arith.addf %29, %31 : vector<32x128xf32>
    %cst_20 = arith.constant 0.000000e+00 : f32
    %33 = vector.broadcast %cst_20 : f32 to vector<32x128xf32>
    %34 = arith.maximumf %32, %33 : vector<32x128xf32>
    %35 = arith.truncf %34 : vector<32x128xf32> to vector<32x128xbf16>
    %c0_21 = arith.constant 0 : index
    %c0_22 = arith.constant 0 : index
    %36 = vector.load %arg6[%c0_21, %c0_22] : memref<128x512xbf16, #tpu.memory_space<vmem>>, vector<128x512xbf16>
    %cst_23 = arith.constant dense<0.000000e+00> : vector<32x512xf32>
    %37 = tpu.matmul %35, %36, %cst_23 {dimension_numbers = #tpu.dot_dimension_numbers<[1], [0], [0], [1], [0, 0, 1, 1], [], []>} : vector<32x128xbf16>, vector<128x512xbf16>, vector<32x512xf32> -> vector<32x512xf32>
    %c0_24 = arith.constant 0 : index
    %c0_25 = arith.constant 0 : index
    %38 = vector.load %arg7[%c0_24, %c0_25] : memref<1x512xf32, #tpu.memory_space<vmem>>, vector<1x512xf32>
    %39 = vector.broadcast %38 : vector<1x512xf32> to vector<32x512xf32>
    %40 = arith.addf %37, %39 : vector<32x512xf32>
    %41 = arith.addf %40, %1 : vector<32x512xf32>
    %cst_26 = arith.constant 0.000000e+00 : f32
    %42 = vector.broadcast %cst_26 : f32 to vector<32x512xf32>
    %43 = arith.maximumf %41, %42 : vector<32x512xf32>
    %44 = vector.shape_cast %43 : vector<32x512xf32> to vector<2x16x512xf32>
    %c0_27 = arith.constant 0 : index
    %c0_28 = arith.constant 0 : index
    %c0_29 = arith.constant 0 : index
    %45 = vector.load %arg8[%c0_27, %c0_28, %c0_29] : memref<2x16x512xf32, #tpu.memory_space<vmem>>, vector<2x16x512xf32>
    tpu.vector_store %arg8[%c0_27, %c0_28, %c0_29], %44 {strides = array<i32>} : memref<2x16x512xf32, #tpu.memory_space<vmem>>, vector<2x16x512xf32>,
    return
  }
  func.func @transform_0(%arg0: i32) -> (i32, i32, i32) {
    %c0_i32 = arith.constant 0 : i32
    %c0_i32_0 = arith.constant 0 : i32
    %c0_i32_1 = arith.constant 0 : i32
    %c0_i32_2 = arith.constant 0 : i32
    return %c0_i32, %c0_i32_0, %c0_i32_1 : i32, i32, i32
  }
  func.func @transform_1(%arg0: i32) -> (i32, i32) {
    %c0_i32 = arith.constant 0 : i32
    %c0_i32_0 = arith.constant 0 : i32
    %c0_i32_1 = arith.constant 0 : i32
    return %c0_i32, %c0_i32_0 : i32, i32
  }
  func.func @transform_2(%arg0: i32) -> (i32, i32) {
    %c0_i32 = arith.constant 0 : i32
    %c0_i32_0 = arith.constant 0 : i32
    %c0_i32_1 = arith.constant 0 : i32
    return %c0_i32, %c0_i32_0 : i32, i32
  }
  func.func @transform_3(%arg0: i32) -> (i32, i32, i32) {
    %c0_i32 = arith.constant 0 : i32
    %c0_i32_0 = arith.constant 0 : i32
    %c0_i32_1 = arith.constant 0 : i32
    %c0_i32_2 = arith.constant 0 : i32
    return %c0_i32, %c0_i32_0, %c0_i32_1 : i32, i32, i32
  }
  func.func @transform_4(%arg0: i32) -> (i32, i32) {
    %c0_i32 = arith.constant 0 : i32
    %c0_i32_0 = arith.constant 0 : i32
    %c0_i32_1 = arith.constant 0 : i32
    return %c0_i32, %c0_i32_0 : i32, i32
  }
  func.func @transform_5(%arg0: i32) -> (i32, i32) {
    %c0_i32 = arith.constant 0 : i32
    %c0_i32_0 = arith.constant 0 : i32
    %c0_i32_1 = arith.constant 0 : i32
    return %c0_i32, %c0_i32_0 : i32, i32
  }
  func.func @transform_6(%arg0: i32) -> (i32, i32) {
    %c0_i32 = arith.constant 0 : i32
    %c0_i32_0 = arith.constant 0 : i32
    %c0_i32_1 = arith.constant 0 : i32
    return %c0_i32, %c0_i32_0 : i32, i32
  }
  func.func @transform_7(%arg0: i32) -> (i32, i32, i32) {
    %c0_i32 = arith.constant 0 : i32
    %c0_i32_0 = arith.constant 0 : i32
    %c0_i32_1 = arith.constant 0 : i32
    %c0_i32_2 = arith.constant 0 : i32
    return %c0_i32, %c0_i32_0, %c0_i32_1 : i32, i32, i32
  }
}

</mosaic_0001>

<bundles_post_ra>
// kernel: tpu_custom_call.1
= control target key start
LH: loop header
LB: loop body
LE: loop exit
PB: predicated region body
PF: predicated region fallthrough
CT: control target
= control target key end

     0   :  { %12 = vsyncpa [#allocation3], 0  ;;  %s1934_s0 = inlined_call_operand.hbm [shape: f32[2,16,512], index: 0, kind: input, shape index: {}]   ;;  %s1935_s1 = inlined_call_operand.hbm [shape: bf16[512,128], index: 1, kind: input, shape index: {}]   ;;  %s1936_s2 = inlined_call_operand.vmem [shape: f32[1,128], index: 2, kind: input, shape index: {}]   ;;  %s1937_s3 = inlined_call_operand.hbm [shape: bf16[3,128,128], index: 3, kind: input, shape index: {}]   ;;  %s1938_s4 = inlined_call_operand.hbm [shape: f32[1,128], index: 4, kind: input, shape index: {}]   ;;  %s1939_s5 = inlined_call_operand.hbm [shape: bf16[128,512], index: 5, kind: input, shape index: {}]   ;;  %s1940_s6 = inlined_call_operand.vmem [shape: f32[1,512], index: 6, kind: input, shape index: {}]   ;;  %s1941_s7 = inlined_call_operand.hbm [shape: f32[2,16,512], index: 7, kind: output, shape index: {}]  }
   0x1   :  { %13 = vsyncpa [#allocation6], 0 }
   0x2   :  { %14 = vsyncpa [#allocation9], 0  ;;  %s33_s26 = sshll.u32 %s1935_s1, 4  ;;  %s34_s26 = int_to_ptr.hbm [resolvable:$true] %s33_s26 }
   0x3   :  { %15 = vsyncpa [#allocation4], 0  ;;  %s1746_s27 = smov [#allocation5]   ;;  %s62_s8 = sshll.u32 %s1938_s4, 4  ;;  %s63_s8 = int_to_ptr.hbm [resolvable:$true] %s62_s8 }
   0x4   :  { %s35_s28 = sshll.u32 %s1746_s27, 4  ;;  %s1747_s9 = smov 64   ;;  %s36_s28 = int_to_ptr.vmem [resolvable:$true] %s35_s28 }
   0x5   :  { %s1748_s10 = smov 4   ;;  %s1749_s11 = smov [#allocation8]  }
   0x6   :  { %41 = dma.hbm_to_vmem [thread:$0]  %s34_s26, 4096, %s36_s28, [#allocation6], %s1747_s9, %s1747_s9, %s1748_s10  }
   0x7   :  { %s64_s12 = sshll.u32 %s1749_s11, 4  ;;  %s20_s15 = sshll.u32 %s1934_s0, 4  ;;  %s65_s12 = int_to_ptr.vmem [resolvable:$true] %s64_s12  ;;  %s21_s15 = int_to_ptr.hbm [resolvable:$true] %s20_s15 }
   0x8   :  { %67 = dma.hbm_to_vmem [thread:$0]  %s63_s8, 16, %s65_s12, [#allocation9]  }
   0x9   :  { %s1750_s1 = smov [#allocation2]   ;;  %s48_s4 = sshll.u32 %s1937_s3, 4  ;;  %s49_s4 = int_to_ptr.hbm [resolvable:$true] %s48_s4 }
   0xa   :  { %s22_s16 = sshll.u32 %s1750_s1, 4  ;;  %s1751_s19 = smov 512   ;;  %s23_s16 = int_to_ptr.vmem [resolvable:$true] %s22_s16 }
   0xb   :  { %s1752_s20 = smov 32   ;;  %s1753_s21 = smov [#allocation7]  }
   0xc   :  { %28 = dma.hbm_to_vmem [thread:$0]  %s21_s15, 2048, %s23_s16, [#allocation3], %s1751_s19, %s1751_s19, %s1752_s20  }
   0xd   :  { %s50_s22 = sshll.u32 %s1753_s21, 4  ;;  %s72_s24 = sshll.u32 %s1939_s5, 4  ;;  %s51_s22 = int_to_ptr.vmem [resolvable:$true] %s50_s22  ;;  %s73_s24 = int_to_ptr.hbm [resolvable:$true] %s72_s24 }
   0xe   :  { %56 = dma.hbm_to_vmem [thread:$0]  %s49_s4, 3072, %s51_s22, [#allocation6], %s1747_s9, %s1747_s9, %s1748_s10  }
   0xf   :  { %s1754_s25 = smov [#allocation10]   ;;  %s1755_s3 = smov 256  }
  0x10   :  { %s74_s26 = sshll.u32 %s1754_s25, 4  ;;  %s1756_s27 = smov 16   ;;  %s75_s26 = int_to_ptr.vmem [resolvable:$true] %s74_s26 }
  0x11   :  { %80 = dma.hbm_to_vmem [thread:$0]  %s73_s24, 4096, %s75_s26, [#allocation9], %s1755_s3, %s1755_s3, %s1756_s27  }
  0x12   :  { %1738 = dma.done.wait [#allocation3], 2048  }
  0x13   :  { %1739 = vsyncadd [#allocation3], 4294965248 }
  0x14   :  { %1740 = dma.done.wait [#allocation6], 7168  }
  0x15   :  { %1741 = vsyncadd [#allocation6], 4294960128 }
  0x16   :  { %1742 = dma.done.wait [#allocation9], 4112  }
  0x17   :  { %1743 = vsyncadd [#allocation9], 4294963184  ;;  %v1491_v0 = vld [vmem:[#allocation5 + $0x38] sm:$0xff]  ;;  %v1490_v4 = vld [vmem:[#allocation5 + $0x30] sm:$0xff]  ;;  %vm498_vm0 = vcmask 1040384   ;;  %vm509_vm2 = vcmask 1047552  }
  0x18   :  { %v1499_v1 = vld [vmem:[#allocation5 + $0x78] sm:$0xff]  ;;  %388 = vmatpush.bf16.msra.mxu0 %v1491_v0  ;;  %v1498_v5 = vld [vmem:[#allocation5 + $0x70] sm:$0xff]  ;;  %v1489_v8 = vld [vmem:[#allocation5 + $0x28] sm:$0xff]  ;;  %vm499_vm1 = vsmask.f32 256  ;;  %s1117_s10 = sshll.u32 %s1941_s7, 4  ;;  %s1118_s10 = int_to_ptr.hbm [resolvable:$true] %s1117_s10 }
  0x19   :  { %v1507_v2 = vld [vmem:[#allocation5 + $0xb8] sm:$0xff]  ;;  %407 = vmatpush.bf16.msra.mxu1 %v1499_v1  ;;  %v1506_v6 = vld [vmem:[#allocation5 + $0xb0] sm:$0xff]  ;;  %v1497_v9 = vld [vmem:[#allocation5 + $0x68] sm:$0xff]  ;;  %vm510_vm3 = vsmask.f32 7424 }
  0x1a   :  { %v1515_v3 = vld [vmem:[#allocation5 + $0xf8] sm:$0xff]  ;;  %426 = vmatpush.bf16.msra.mxu2 %v1507_v2  ;;  %v1514_v7 = vld [vmem:[#allocation5 + $0xf0] sm:$0xff]  ;;  %v1505_v10 = vld [vmem:[#allocation5 + $0xa8] sm:$0xff] }
  0x1b   :  { %445 = vmatpush.bf16.msra.mxu3 %v1515_v3  ;;  %v1513_v11 = vld [vmem:[#allocation5 + $0xe8] sm:$0xff]  ;;  %v1488_v12 = vld [vmem:[#allocation5 + $0x20] sm:$0xff]  ;;  %v1487_v16 = vld [vmem:[#allocation5 + $0x18] sm:$0xff] }
  0x1c   :  { %389 = vmatpush.bf16.msra.mxu0 %v1490_v4  ;;  %v1496_v13 = vld [vmem:[#allocation5 + $0x60] sm:$0xff]  ;;  %v1495_v17 = vld [vmem:[#allocation5 + $0x58] sm:$0xff]  ;;  %v1486_v20 = vld [vmem:[#allocation5 + $0x10] sm:$0xff] }
  0x1d   :  { %408 = vmatpush.bf16.msra.mxu1 %v1498_v5  ;;  %v1504_v14 = vld [vmem:[#allocation5 + $0xa0] sm:$0xff]  ;;  %v1503_v18 = vld [vmem:[#allocation5 + $0x98] sm:$0xff]  ;;  %v1494_v21 = vld [vmem:[#allocation5 + $0x50] sm:$0xff] }
  0x1e   :  { %427 = vmatpush.bf16.msra.mxu2 %v1506_v6  ;;  %v1512_v15 = vld [vmem:[#allocation5 + $0xe0] sm:$0xff]  ;;  %v1511_v19 = vld [vmem:[#allocation5 + $0xd8] sm:$0xff]  ;;  %v1502_v22 = vld [vmem:[#allocation5 + $0x90] sm:$0xff] }
  0x1f   :  { %446 = vmatpush.bf16.msra.mxu3 %v1514_v7  ;;  %v1510_v23 = vld [vmem:[#allocation5 + $0xd0] sm:$0xff]  ;;  %v1485_v24 = vld [vmem:[#allocation5 + $0x8] sm:$0xff]  ;;  %v1484_v28 = vld [vmem:[#allocation5] sm:$0xff] }
  0x20   :  { %390 = vmatpush.bf16.msra.mxu0 %v1489_v8  ;;  %v1493_v25 = vld [vmem:[#allocation5 + $0x48] sm:$0xff]  ;;  %v1492_v29 = vld [vmem:[#allocation5 + $0x40] sm:$0xff]  ;;  %v1824_v36 = vld [vmem:[#allocation2 + $0x10] sm:$0xff] }
  0x21   :  { %409 = vmatpush.bf16.msra.mxu1 %v1497_v9  ;;  %v1501_v26 = vld [vmem:[#allocation5 + $0x88] sm:$0xff]  ;;  %v1500_v30 = vld [vmem:[#allocation5 + $0x80] sm:$0xff]  ;;  %v1826_v37 = vld [vmem:[#allocation2 + $0x30] sm:$0xff] }
  0x22   :  { %428 = vmatpush.bf16.msra.mxu2 %v1505_v10  ;;  %v1509_v27 = vld [vmem:[#allocation5 + $0xc8] sm:$0xff]  ;;  %v1508_v31 = vld [vmem:[#allocation5 + $0xc0] sm:$0xff]  ;;  %v1828_v38 = vld [vmem:[#allocation2 + $0x18] sm:$0xff]  ;;  %v122_v43 = vpack.c.bf16 %v1826_v37, %v1824_v36 }
  0x23   :  { %447 = vmatpush.bf16.msra.mxu3 %v1513_v11  ;;  %v1816_v32 = vld [vmem:[#allocation2] sm:$0xff]  ;;  %v1820_v34 = vld [vmem:[#allocation2 + $0x8] sm:$0xff]  ;;  %v1830_v39 = vld [vmem:[#allocation2 + $0x38] sm:$0xff] }
  0x24   :  { %391 = vmatpush.bf16.msra.mxu0 %v1488_v12  ;;  %v1818_v33 = vld [vmem:[#allocation2 + $0x20] sm:$0xff]  ;;  %v1822_v35 = vld [vmem:[#allocation2 + $0x28] sm:$0xff]  ;;  %v1531_v40 = vld [vmem:[#allocation7 + $0x78] sm:$0xff]  ;;  %v123_v44 = vpack.c.bf16 %v1830_v39, %v1828_v38 }
  0x25   :  { %410 = vmatpush.bf16.msra.mxu1 %v1496_v13  ;;  %v120_v41 = vpack.c.bf16 %v1818_v33, %v1816_v32  ;;  %v121_v42 = vpack.c.bf16 %v1822_v35, %v1820_v34  ;;  %v1840_v45 = vld [vmem:[#allocation2 + $0x40] sm:$0xff]  ;;  %v1844_v47 = vld [vmem:[#allocation2 + $0x48] sm:$0xff]  ;;  %v1848_v49 = vld [vmem:[#allocation2 + $0x50] sm:$0xff] }
  0x26   :  { %429 = vmatpush.bf16.msra.mxu2 %v1504_v14  ;;  %v1842_v46 = vld [vmem:[#allocation2 + $0x60] sm:$0xff]  ;;  %v1846_v48 = vld [vmem:[#allocation2 + $0x68] sm:$0xff]  ;;  %v1850_v50 = vld [vmem:[#allocation2 + $0x70] sm:$0xff] }
  0x27   :  { %448 = vmatpush.bf16.msra.mxu3 %v1512_v15  ;;  %v1852_v51 = vld [vmem:[#allocation2 + $0x58] sm:$0xff]  ;;  %v124_v53 = vpack.c.bf16 %v1842_v46, %v1840_v45  ;;  %v125_v54 = vpack.c.bf16 %v1846_v48, %v1844_v47  ;;  %v126_v55 = vpack.c.bf16 %v1850_v50, %v1848_v49  ;;  %v1530_v57 = vld [vmem:[#allocation7 + $0x70] sm:$0xff]  ;;  %v1529_v60 = vld [vmem:[#allocation7 + $0x68] sm:$0xff] }
  0x28   :  { %392 = vmatpush.bf16.msra.mxu0 %v1487_v16  ;;  %v1854_v52 = vld [vmem:[#allocation2 + $0x78] sm:$0xff]  ;;  %v1538_v61 = vld [vmem:[#allocation7 + $0xb0] sm:$0xff]  ;;  %v1528_v63 = vld [vmem:[#allocation7 + $0x60] sm:$0xff] }
  0x29   :  { %411 = vmatpush.bf16.msra.mxu1 %v1495_v17  ;;  %v127_v56 = vpack.c.bf16 %v1854_v52, %v1852_v51  ;;  %v1539_v58 = vld [vmem:[#allocation7 + $0xb8] sm:$0xff]  ;;  %v1522_v62 = vld [vmem:[#allocation7 + $0x30] sm:$0xff]  ;;  %v1537_v0 = vld [vmem:[#allocation7 + $0xa8] sm:$0xff] }
  0x2a   :  { %430 = vmatpush.bf16.msra.mxu2 %v1503_v18  ;;  %v1523_v59 = vld [vmem:[#allocation7 + $0x38] sm:$0xff]  ;;  %v1521_v1 = vld [vmem:[#allocation7 + $0x28] sm:$0xff]  ;;  %v1536_v3 = vld [vmem:[#allocation7 + $0xa0] sm:$0xff] }
  0x2b   :  { %449 = vmatpush.bf16.msra.mxu3 %v1511_v19  ;;  %v1527_v2 = vld [vmem:[#allocation7 + $0x58] sm:$0xff]  ;;  %v1520_v4 = vld [vmem:[#allocation7 + $0x20] sm:$0xff]  ;;  %v1526_v5 = vld [vmem:[#allocation7 + $0x50] sm:$0xff] }
  0x2c   :  { %393 = vmatpush.bf16.msra.mxu0 %v1486_v20  ;;  %v1535_v6 = vld [vmem:[#allocation7 + $0x98] sm:$0xff]  ;;  %v1525_v8 = vld [vmem:[#allocation7 + $0x48] sm:$0xff]  ;;  %v1534_v9 = vld [vmem:[#allocation7 + $0x90] sm:$0xff] }
  0x2d   :  { %412 = vmatpush.bf16.msra.mxu1 %v1494_v21  ;;  %v1519_v7 = vld [vmem:[#allocation7 + $0x18] sm:$0xff]  ;;  %v1518_v10 = vld [vmem:[#allocation7 + $0x10] sm:$0xff]  ;;  %v1524_v11 = vld [vmem:[#allocation7 + $0x40] sm:$0xff] }
  0x2e   :  { %431 = vmatpush.bf16.msra.mxu2 %v1502_v22  ;;  %v1533_v12 = vld [vmem:[#allocation7 + $0x88] sm:$0xff]  ;;  %v1592_v14 = vld [vmem:[%s1936_s2] ss:$0 sm:$0xff]  ;;  %vm1870_vm4 = vmand %vm498_vm0, %vm499_vm1 }
  0x2f   :  { %450 = vmatpush.bf16.msra.mxu3 %v1510_v23  ;;  %v1517_v13 = vld [vmem:[#allocation7 + $0x8] sm:$0xff]  ;;  %v1532_v15 = vld [vmem:[#allocation7 + $0x80] sm:$0xff]  ;;  %vm1874_vm5 = vmand %vm509_vm2, %vm510_vm3 }
  0x30   :  { %394 = vmatpush.bf16.msra.mxu0 %v1485_v24  ;;  %v1516_v16 = vld [vmem:[#allocation7] sm:$0xff] }
  0x31   :  { %413 = vmatpush.bf16.msra.mxu1 %v1493_v25 }
  0x32   :  { %432 = vmatpush.bf16.msra.mxu2 %v1501_v26 }
  0x33   :  { %451 = vmatpush.bf16.msra.mxu3 %v1509_v27 }
  0x34   :  { %395 = vmatpush.bf16.msra.mxu0 %v1484_v28 }
  0x35   :  { %414 = vmatpush.bf16.msra.mxu1 %v1492_v29 }
  0x36   :  { %433 = vmatpush.bf16.msra.mxu2 %v1500_v30 }
  0x37   :  { %452 = vmatpush.bf16.msra.mxu3 %v1508_v31  ;;  %396 = vmatmul.bf16.vlgmr.msra.gmra.mxu0 %v120_v41 }
  0x38   :  { %597 = vmatpush.bf16.msrb.mxu0 %v1531_v40  ;;  %415 = vmatmul.bf16.vlgmr.msra.gmra.mxu1 %v121_v42 }
  0x39   :  { %434 = vmatmul.bf16.vlgmr.msra.gmra.mxu2 %v122_v43  ;;  %664 = vmatpush.bf16.msrb.mxu1 %v1523_v59 }
  0x3a   :  { %453 = vmatmul.bf16.vlgmr.msra.gmra.mxu3 %v123_v44  ;;  %748 = vmatpush.bf16.msrb.mxu2 %v1539_v58 }
  0x3c   :  { %598 = vmatpush.bf16.msrb.mxu0 %v1530_v57 }
  0x3d   :  { %665 = vmatpush.bf16.msrb.mxu1 %v1522_v62 }
  0x3e   :  { %749 = vmatpush.bf16.msrb.mxu2 %v1538_v61  ;;  %v1478_v61 = vld [vmem:[#allocation10 + $0xe8] sm:$0xf] }
  0x40   :  { %599 = vmatpush.bf16.msrb.mxu0 %v1529_v60  ;;  %v1472_v60 = vld [vmem:[#allocation10 + $0xf0] sm:$0xf0] }
  0x41   :  { %666 = vmatpush.bf16.msrb.mxu1 %v1521_v1  ;;  %v1480_v1 = vld [vmem:[#allocation10 + $0xf8] sm:$0xf0] }
  0x42   :  { %750 = vmatpush.bf16.msrb.mxu2 %v1537_v0  ;;  %v1569_v0 = vld [vmem:[#allocation10 + $0xec] sm:$0xf] }
  0x44   :  { %600 = vmatpush.bf16.msrb.mxu0 %v1528_v63  ;;  %v1571_v63 = vld [vmem:[#allocation10 + $0xf4] sm:$0xf0] }
  0x45   :  { %667 = vmatpush.bf16.msrb.mxu1 %v1520_v4  ;;  %v1483_v4 = vor.u32 %v1569_v0, %v1480_v1  ;;  %v1564_v0 = vld [vmem:[#allocation10 + $0xc4] sm:$0xf] }
  0x46   :  { %751 = vmatpush.bf16.msrb.mxu2 %v1536_v3  ;;  %v1479_v3 = vor.u32 %v1571_v63, %v1478_v61  ;;  %v1454_v61 = vld [vmem:[#allocation10 + $0xc0] sm:$0xf]  ;;  %v1566_v63 = vld [vmem:[#allocation10 + $0xcc] sm:$0xf0] }
  0x47   :  { %401 = vmatmul.bf16.gmra.mxu0 %v124_v53  ;;  %v1470_v53 = vld [vmem:[#allocation10 + $0xe0] sm:$0xf]  ;;  %v1455_v1 = vor.u32 %v1566_v63, %v1454_v61 }
  0x48   :  { %420 = vmatmul.bf16.gmra.mxu1 %v125_v54  ;;  %601 = vmatpush.bf16.msrb.mxu0 %v1527_v2  ;;  %v1570_v54 = vld [vmem:[#allocation10 + $0xec] sm:$0xf0]  ;;  %v1390_v63 = vld [vmem:[#allocation10 + $0x40] sm:$0xf] }
  0x49   :  { %439 = vmatmul.bf16.gmra.mxu2 %v126_v55  ;;  %668 = vmatpush.bf16.msrb.mxu1 %v1519_v7  ;;  %v1568_v55 = vld [vmem:[#allocation10 + $0xe4] sm:$0xf]  ;;  %v1471_v59 = vor.u32 %v1570_v54, %v1470_v53 }
  0x4a   :  { %458 = vmatmul.bf16.gmra.mxu3 %v127_v56  ;;  %752 = vmatpush.bf16.msrb.mxu2 %v1535_v6  ;;  %v1867_v62 = vor.u32 %v1568_v55, %v1472_v60 }
  0x4b   :  { %987 = vmatpush.bf16.msrb.mxu3 %v1471_v59 }
  0x4c   :  { %602 = vmatpush.bf16.msrb.mxu0 %v1526_v5 }
  0x4d   :  { %669 = vmatpush.bf16.msrb.mxu1 %v1518_v10 }
  0x4e   :  { %753 = vmatpush.bf16.msrb.mxu2 %v1534_v9 }
  0x4f   :  { %988 = vmatpush.bf16.msrb.mxu3 %v1455_v1  ;;  %v1548_v1 = vld [vmem:[#allocation10 + $0x44] sm:$0xf] }
  0x50   :  { %603 = vmatpush.bf16.msrb.mxu0 %v1525_v8 }
  0x51   :  { %670 = vmatpush.bf16.msrb.mxu1 %v1517_v13 }
  0x52   :  { %754 = vmatpush.bf16.msrb.mxu2 %v1533_v12 }
  0x54   :  { %604 = vmatpush.bf16.msrb.mxu0 %v1524_v11 }
  0x55   :  { %671 = vmatpush.bf16.msrb.mxu1 %v1516_v16 }
  0x56   :  { %755 = vmatpush.bf16.msrb.mxu2 %v1532_v15 }
  0x58   :  { %1006 = vmatpush.bf16.msra.mxu0 %v1867_v62 }
  0x59   :  { %1025 = vmatpush.bf16.msra.mxu1 %v1479_v3  ;;  %v1462_v3 = vld [vmem:[#allocation10 + $0xc8] sm:$0xf] }
  0x5a   :  { %1044 = vmatpush.bf16.msra.mxu2 %v1483_v4  ;;  %v1567_v4 = vld [vmem:[#allocation10 + $0xd4] sm:$0xf0] }
  0xb4   :  { %v397_v17 = vpop.f32.mrf.mxu0 }
  0xb5   :  { %v416_v18 = vpop.f32.mrf.mxu1  ;;  %v398_v19 = vadd.f32 %v1592_v14, %v397_v17 }
  0xb7   :  { %v417_v20 = vadd.f32 %v416_v18, %v398_v19 }
  0xbc   :  { %v435_v21 = vpop.f32.mrf.mxu2  ;;  %v399_v24 = vpop.f32.mrf.mxu0 }
  0xbd   :  { %v454_v22 = vpop.f32.mrf.mxu3  ;;  %v436_v23 = vadd.f32 %v435_v21, %v417_v20  ;;  %v418_v25 = vpop.f32.mrf.mxu1  ;;  %v400_v26 = vadd.f32 %v1592_v14, %v399_v24  ;;  %v1448_v20 = vld [vmem:[#allocation10 + $0xb8] sm:$0xf0] }
  0xbf   :  { %v455_v27 = vadd.f32 %v454_v22, %v436_v23  ;;  %v419_v28 = vadd.f32 %v418_v25, %v400_v26 }
  0xc1   :  { %v464_v31 = vmax.f32 %v455_v27, 0.0 }
  0xc3   :  { %v468_v56 = vpack.c.bf16 %v464_v31, %v464_v31 }
  0xc4   :  { %v437_v29 = vpop.f32.mrf.mxu2  ;;  %v402_v41 = vpop.f32.mrf.mxu0 }
  0xc5   :  { %v456_v30 = vpop.f32.mrf.mxu3  ;;  %v438_v40 = vadd.f32 %v437_v29, %v419_v28  ;;  %v403_v42 = vadd.f32 %v1592_v14, %v402_v41  ;;  %v421_v44 = vpop.f32.mrf.mxu1  ;;  %v476_v7 = vunpack.c.l.b16 %v468_v56 }
  0xc7   :  { %v457_v43 = vadd.f32 %v456_v30, %v438_v40  ;;  %v422_v58 = vadd.f32 %v421_v44, %v403_v42 }
  0xc9   :  { %v465_v57 = vmax.f32 %v457_v43, 0.0 }
  0xcb   :  { %v469_v2 = vpack.c.bf16 %v465_v57, %v465_v57 }
  0xcc   :  { %v440_v5 = vpop.f32.mrf.mxu2  ;;  %v404_v10 = vpop.f32.mrf.mxu0 }
  0xcd   :  { %v459_v6 = vpop.f32.mrf.mxu3  ;;  %v477_v8 = vunpack.c.l.b16 %v469_v2  ;;  %v441_v9 = vadd.f32 %v440_v5, %v422_v58  ;;  %v405_v11 = vadd.f32 %v1592_v14, %v404_v10  ;;  %v423_v17 = vpop.f32.mrf.mxu1  ;;  %v1456_v2 = vld [vmem:[#allocation10 + $0xd0] sm:$0xf0]  ;;  %v1422_v14 = vld [vmem:[#allocation10 + $0x80] sm:$0xf] }
  0xce   :  { %v1886_v5 = vor.u32 %v1564_v0, %v1456_v2  ;;  %v1550_v0 = vld [vmem:[#allocation10 + $0x4c] sm:$0xf0] }
  0xcf   :  { %v480_v12 = vpack.c.b16 %v477_v8, %v476_v7  ;;  %v460_v13 = vadd.f32 %v459_v6, %v441_v9  ;;  %v424_v18 = vadd.f32 %v423_v17, %v405_v11  ;;  %v1463_v6 = vor.u32 %v1567_v4, %v1462_v3  ;;  %v1565_v7 = vld [vmem:[#allocation10 + $0xcc] sm:$0xf]  ;;  %v1464_v8 = vld [vmem:[#allocation10 + $0xd8] sm:$0xf0]  ;;  %v1438_v9 = vld [vmem:[#allocation10 + $0xa0] sm:$0xf] }
  0xd0   :  { %v1467_v10 = vor.u32 %v1565_v7, %v1464_v8  ;;  %v1562_v11 = vld [vmem:[#allocation10 + $0xac] sm:$0xf0]  ;;  %1007 = vmatpush.bf16.msra.mxu0 %v1886_v5  ;;  %v1391_v2 = vor.u32 %v1550_v0, %v1390_v63  ;;  %v1392_v3 = vld [vmem:[#allocation10 + $0x50] sm:$0xf0]  ;;  %v1398_v4 = vld [vmem:[#allocation10 + $0x48] sm:$0xf] }
  0xd1   :  { %605 = vmatmul.bf16.vlgmr.msrb.gmra.mxu0 %v480_v12  ;;  %v483_v15 = vshrl.u32 %v480_v12, 16  ;;  %v486_v16 = vshll.u32 %v480_v12, 16  ;;  %v466_v23 = vmax.f32 %v460_v13, 0.0  ;;  %1026 = vmatpush.bf16.msra.mxu1 %v1463_v6  ;;  %v1439_v12 = vor.u32 %v1562_v11, %v1438_v9  ;;  %v1560_v13 = vld [vmem:[#allocation10 + $0xa4] sm:$0xf] }
  0xd2   :  { %1045 = vmatpush.bf16.msra.mxu2 %v1467_v10  ;;  %v1551_v6 = vld [vmem:[#allocation10 + $0x54] sm:$0xf0]  ;;  %v1395_v7 = vor.u32 %v1548_v1, %v1392_v3  ;;  %v1549_v9 = vld [vmem:[#allocation10 + $0x4c] sm:$0xf]  ;;  %v1400_v10 = vld [vmem:[#allocation10 + $0x58] sm:$0xf0] }
  0xd3   :  { %v485_v19 = vrot.slane %v483_v15, 7  ;;  %v503_v21 = vrot.slane %v486_v16, 1  ;;  %v470_v31 = vpack.c.bf16 %v466_v23, %v466_v23  ;;  %989 = vmatpush.bf16.msrb.mxu3 %v1439_v12  ;;  %v1558_v23 = vld [vmem:[#allocation10 + $0x8c] sm:$0xf0]  ;;  %v1399_v8 = vor.u32 %v1551_v6, %v1398_v4  ;;  %v1374_v12 = vld [vmem:[#allocation10 + $0x20] sm:$0xf] }
  0xd4   :  { %v442_v22 = vpop.f32.mrf.mxu2  ;;  %v1403_v11 = vor.u32 %v1549_v9, %v1400_v10  ;;  %v1593_v63 = vld [vmem:[#allocation8] ss:$0 sm:$0xff] }
  0xd5   :  { %v443_v24 = vadd.f32 %v442_v22, %v424_v18  ;;  %v488_v25 = vor.u32 %v486_v16, %v485_v19  ;;  %v504_v26 = vor.u32 %v503_v21, %v483_v15  ;;  %v461_v27 = vpop.f32.mrf.mxu3  ;;  %v478_v42 = vunpack.c.l.b16 %v470_v31  ;;  %v1440_v15 = vld [vmem:[#allocation10 + $0xb0] sm:$0xf0]  ;;  %v1446_v16 = vld [vmem:[#allocation10 + $0xa8] sm:$0xf]  ;;  %v1563_v18 = vld [vmem:[#allocation10 + $0xb4] sm:$0xf0] }
  0xd6   :  { %v1889_v17 = vor.u32 %v1560_v13, %v1440_v15  ;;  %v1561_v19 = vld [vmem:[#allocation10 + $0xac] sm:$0xf]  ;;  %v1447_v21 = vor.u32 %v1563_v18, %v1446_v16  ;;  %v1546_v13 = vld [vmem:[#allocation10 + $0x2c] sm:$0xf0]  ;;  %v1544_v15 = vld [vmem:[#allocation10 + $0x24] sm:$0xf] }
  0xd7   :  { %v462_v28 = vadd.f32 %v461_v27, %v443_v24  ;;  %v501_v29 = vsel %vm1870_vm4, 0, %v488_v25  ;;  %v512_v30 = vsel %vm1874_vm5, %v504_v26, 0  ;;  %v1451_v22 = vor.u32 %v1561_v19, %v1448_v20  ;;  %v1556_v24 = vld [vmem:[#allocation10 + $0x84] sm:$0xf]  ;;  %v1424_v26 = vld [vmem:[#allocation10 + $0x90] sm:$0xf0] }
  0xd8   :  { %672 = vmatmul.bf16.vlgmr.msrb.gmra.mxu1 %v501_v29  ;;  %756 = vmatmul.bf16.vlgmr.msrb.gmra.mxu2 %v512_v30  ;;  %v1423_v25 = vor.u32 %v1558_v23, %v1422_v14  ;;  %v1430_v27 = vld [vmem:[#allocation10 + $0x88] sm:$0xf]  ;;  %v1892_v29 = vor.u32 %v1556_v24, %v1424_v26  ;;  %v1557_v31 = vld [vmem:[#allocation10 + $0x8c] sm:$0xf]  ;;  %v1375_v16 = vor.u32 %v1546_v13, %v1374_v12  ;;  %v1376_v18 = vld [vmem:[#allocation10 + $0x30] sm:$0xf0] }
  0xd9   :  { %v467_v40 = vmax.f32 %v462_v28, 0.0  ;;  %1008 = vmatpush.bf16.msra.mxu0 %v1889_v17  ;;  %1027 = vmatpush.bf16.msra.mxu1 %v1447_v21  ;;  %v1559_v28 = vld [vmem:[#allocation10 + $0x94] sm:$0xf0]  ;;  %v1382_v19 = vld [vmem:[#allocation10 + $0x28] sm:$0xf]  ;;  %v1379_v21 = vor.u32 %v1544_v15, %v1376_v18 }
  0xda   :  { %1046 = vmatpush.bf16.msra.mxu2 %v1451_v22  ;;  %v1431_v30 = vor.u32 %v1559_v28, %v1430_v27  ;;  %990 = vmatpush.bf16.msrb.mxu3 %v1423_v25  ;;  %v1547_v20 = vld [vmem:[#allocation10 + $0x34] sm:$0xf0]  ;;  %v1545_v14 = vld [vmem:[#allocation10 + $0x2c] sm:$0xf]  ;;  %v1384_v23 = vld [vmem:[#allocation10 + $0x38] sm:$0xf0] }
  0xdb   :  { %v471_v41 = vpack.c.bf16 %v467_v40, %v467_v40  ;;  %v1432_v40 = vld [vmem:[#allocation10 + $0x98] sm:$0xf0]  ;;  %v1383_v22 = vor.u32 %v1547_v20, %v1382_v19  ;;  %v1387_v24 = vor.u32 %v1545_v14, %v1384_v23  ;;  %v1358_v25 = vld [vmem:[#allocation10] sm:$0xf]  ;;  %v1542_v26 = vld [vmem:[#allocation10 + $0xc] sm:$0xf0] }
  0xdc   :  { %v1540_v27 = vld [vmem:[#allocation10 + $0x4] sm:$0xf]  ;;  %v1359_v28 = vor.u32 %v1542_v26, %v1358_v25 }
  0xdd   :  { %v479_v43 = vunpack.c.l.b16 %v471_v41  ;;  %v1435_v41 = vor.u32 %v1557_v31, %v1432_v40  ;;  %1009 = vmatpush.bf16.msra.mxu0 %v1892_v29  ;;  %1028 = vmatpush.bf16.msra.mxu1 %v1431_v30  ;;  %v1360_v30 = vld [vmem:[#allocation10 + $0x10] sm:$0xf0]  ;;  %v1366_v31 = vld [vmem:[#allocation10 + $0x8] sm:$0xf]  ;;  %v1543_v40 = vld [vmem:[#allocation10 + $0x14] sm:$0xf0] }
  0xdf   :  { %v481_v44 = vpack.c.b16 %v479_v43, %v478_v42  ;;  %v1406_v42 = vld [vmem:[#allocation10 + $0x60] sm:$0xf]  ;;  %v1554_v43 = vld [vmem:[#allocation10 + $0x6c] sm:$0xf0]  ;;  %1047 = vmatpush.bf16.msra.mxu2 %v1435_v41  ;;  %v1363_v41 = vor.u32 %v1540_v27, %v1360_v30 }
  0xe1   :  { %610 = vmatmul.bf16.gmra.mxu0 %v481_v44  ;;  %v490_v53 = vshrl.u32 %v481_v44, 16  ;;  %v493_v54 = vshll.u32 %v481_v44, 16  ;;  %v1552_v44 = vld [vmem:[#allocation10 + $0x64] sm:$0xf] }
  0xe3   :  { %v492_v55 = vrot.slane %v490_v53, 7  ;;  %v505_v56 = vrot.slane %v493_v54, 1 }
  0xe5   :  { %v495_v57 = vor.u32 %v493_v54, %v492_v55  ;;  %v506_v58 = vor.u32 %v505_v56, %v490_v53  ;;  %v1407_v53 = vor.u32 %v1554_v43, %v1406_v42  ;;  %v1408_v54 = vld [vmem:[#allocation10 + $0x70] sm:$0xf0]  ;;  %v1414_v55 = vld [vmem:[#allocation10 + $0x68] sm:$0xf]  ;;  %v1555_v56 = vld [vmem:[#allocation10 + $0x74] sm:$0xf0]  ;;  %v1367_v42 = vor.u32 %v1543_v40, %v1366_v31 }
  0xe6   :  { %v1541_v43 = vld [vmem:[#allocation10 + $0xc] sm:$0xf] }
  0xe7   :  { %v502_v59 = vsel %vm1870_vm4, 0, %v495_v57  ;;  %v513_v60 = vsel %vm1874_vm5, %v506_v58, 0  ;;  %v1895_v57 = vor.u32 %v1552_v44, %v1408_v54  ;;  %v1415_v58 = vor.u32 %v1555_v56, %v1414_v55  ;;  %991 = vmatpush.bf16.msrb.mxu3 %v1407_v53  ;;  %v1368_v44 = vld [vmem:[#allocation10 + $0x18] sm:$0xf0] }
  0xe8   :  { %677 = vmatmul.bf16.gmra.mxu1 %v502_v59  ;;  %761 = vmatmul.bf16.gmra.mxu2 %v513_v60  ;;  %v1553_v59 = vld [vmem:[#allocation10 + $0x6c] sm:$0xf]  ;;  %v1416_v60 = vld [vmem:[#allocation10 + $0x78] sm:$0xf0]  ;;  %v1371_v53 = vor.u32 %v1541_v43, %v1368_v44 }
  0xe9   :  { %v1419_v61 = vor.u32 %v1553_v59, %v1416_v60  ;;  %1010 = vmatpush.bf16.msra.mxu0 %v1895_v57  ;;  %1029 = vmatpush.bf16.msra.mxu1 %v1415_v58 }
  0xeb   :  { %1048 = vmatpush.bf16.msra.mxu2 %v1419_v61  ;;  %992 = vmatpush.bf16.msrb.mxu3 %v1391_v2 }
  0xed   :  { %1011 = vmatpush.bf16.msra.mxu0 %v1395_v7  ;;  %1030 = vmatpush.bf16.msra.mxu1 %v1399_v8 }
  0xef   :  { %1049 = vmatpush.bf16.msra.mxu2 %v1403_v11  ;;  %993 = vmatpush.bf16.msrb.mxu3 %v1375_v16 }
  0xf1   :  { %1012 = vmatpush.bf16.msra.mxu0 %v1379_v21  ;;  %1031 = vmatpush.bf16.msra.mxu1 %v1383_v22 }
  0xf3   :  { %1050 = vmatpush.bf16.msra.mxu2 %v1387_v24  ;;  %994 = vmatpush.bf16.msrb.mxu3 %v1359_v28 }
  0xf5   :  { %1013 = vmatpush.bf16.msra.mxu0 %v1363_v41  ;;  %1032 = vmatpush.bf16.msra.mxu1 %v1367_v42 }
  0xf7   :  { %1051 = vmatpush.bf16.msra.mxu2 %v1371_v53  ;;  %1572 = vmatpush.bf16.msra.mxu3 %v1867_v62 }
  0xfb   :  { %1573 = vmatpush.bf16.msra.mxu3 %v1886_v5 }
  0xff   :  { %1574 = vmatpush.bf16.msra.mxu3 %v1889_v17 }
 0x103   :  { %1575 = vmatpush.bf16.msra.mxu3 %v1892_v29 }
 0x107   :  { %1576 = vmatpush.bf16.msra.mxu3 %v1895_v57 }
 0x10b   :  { %1577 = vmatpush.bf16.msra.mxu3 %v1395_v7 }
 0x10f   :  { %1578 = vmatpush.bf16.msra.mxu3 %v1379_v21  ;;  %v817_v21 = vld [vmem:[%s1940_s6] sm:$0xf]  ;;  %s1757_s6 = smov [#allocation11]  }
 0x110   :  { %v1906_v22 = vperm.slane %v817_v21, 1  ;;  %v821_v14 = vperm.slane %v817_v21, 2  ;;  %v819_v28 = vperm.slane %v817_v21, 0  ;;  %v822_v31 = vperm.slane %v817_v21, 3  ;;  %s1115_s30 = sshll.u32 %s1757_s6, 4  ;;  %s1116_s30 = int_to_ptr.vmem [resolvable:$true] %s1115_s30 }
 0x113   :  { %1579 = vmatpush.bf16.msra.mxu3 %v1363_v41 }
 0x14e   :  { %v606_v54 = vpop.f32.mrf.mxu0 }
 0x155   :  { %v673_v55 = vpop.f32.mrf.mxu1 }
 0x156   :  { %v608_v58 = vpop.f32.mrf.mxu0  ;;  %v674_v60 = vadd.f32 %v673_v55, %v606_v54 }
 0x15b   :  { %v757_v56 = vpop.f32.mrf.mxu2 }
 0x15c   :  { %v767_v61 = vadd.f32 %v757_v56, %v674_v60 }
 0x15d   :  { %v675_v59 = vpop.f32.mrf.mxu1 }
 0x15e   :  { %v676_v0 = vadd.f32 %v675_v59, %v608_v58  ;;  %v775_v62 = vadd.f32 %v1593_v63, %v767_v61  ;;  %v611_v17 = vpop.f32.mrf.mxu0 }
 0x160   :  { %v779_v4 = vmax.f32 %v775_v62, 0.0 }
 0x163   :  { %v759_v1 = vpop.f32.mrf.mxu2 }
 0x164   :  { %v768_v5 = vadd.f32 %v759_v1, %v676_v0 }
 0x165   :  { %v678_v2 = vpop.f32.mrf.mxu1 }
 0x166   :  { %v776_v3 = vadd.f32 %v1593_v63, %v768_v5  ;;  %v679_v57 = vadd.f32 %v678_v2, %v611_v17  ;;  %v613_v10 = vpop.f32.mrf.mxu0 }
 0x168   :  { %v780_v29 = vmax.f32 %v776_v3, 0.0 }
 0x16a   :  { %v783_v6 = vpack.c.bf16 %v780_v29, %v779_v4 }
 0x16b   :  { %v762_v8 = vpop.f32.mrf.mxu2 }
 0x16c   :  { %995 = vmatmul.bf16.vlgmr.msrb.gmra.mxu3 %v783_v6  ;;  %1014 = vmatmul.bf16.vlgmr.msra.gmra.mxu0 %v783_v6  ;;  %v769_v9 = vadd.f32 %v762_v8, %v679_v57 }
 0x16d   :  { %1033 = vmatmul.bf16.vlgmr.msra.gmra.mxu1 %v783_v6  ;;  %1052 = vmatmul.bf16.vlgmr.msra.gmra.mxu2 %v783_v6  ;;  %v680_v7 = vpop.f32.mrf.mxu1 }
 0x16e   :  { %v681_v11 = vadd.f32 %v680_v7, %v613_v10  ;;  %v777_v13 = vadd.f32 %v1593_v63, %v769_v9 }
 0x170   :  { %v781_v18 = vmax.f32 %v777_v13, 0.0 }
 0x173   :  { %v764_v12 = vpop.f32.mrf.mxu2 }
 0x174   :  { %v770_v15 = vadd.f32 %v764_v12, %v681_v11 }
 0x176   :  { %v778_v16 = vadd.f32 %v1593_v63, %v770_v15 }
 0x178   :  { %v782_v19 = vmax.f32 %v778_v16, 0.0 }
 0x17a   :  { %v784_v20 = vpack.c.bf16 %v782_v19, %v781_v18 }
 0x17c   :  { %1000 = vmatmul.bf16.gmra.mxu3 %v784_v20 }
 0x17d   :  { %1038 = vmatmul.bf16.gmra.mxu1 %v784_v20  ;;  %1057 = vmatmul.bf16.gmra.mxu2 %v784_v20 }
 0x18c   :  { %1019 = vmatmul.bf16.vlgmr.msra.gmra.mxu3 %v784_v20 }
 0x1e9   :  { %v1015_v23 = vpop.f32.mrf.mxu0 }
 0x1ea   :  { %v1016_v24 = vadd.f32 %v1015_v23, %v1906_v22  ;;  %v1034_v25 = vpop.f32.mrf.mxu1 }
 0x1eb   :  { %v1035_v26 = vadd.f32 %v1034_v25, %v821_v14 }
 0x1ec   :  { %v1064_v27 = vadd.f32 %v1016_v24, %v1820_v34 }
 0x1ed   :  { %v1065_v30 = vadd.f32 %v1035_v26, %v1824_v36 }
 0x1ee   :  { %v1080_v40 = vmax.f32 %v1064_v27, 0.0 }
 0x1ef   :  { %v1081_v41 = vmax.f32 %v1065_v30, 0.0  ;;  %v996_v42 = vpop.f32.mrf.mxu3 }
 0x1f0   :  { %1096 = vst [vmem:[#allocation11 + $0x8] sm:$0xff] %v1080_v40  ;;  %v997_v43 = vadd.f32 %v996_v42, %v819_v28  ;;  %v1053_v44 = vpop.f32.mrf.mxu2 }
 0x1f1   :  { %1097 = vst [vmem:[#allocation11 + $0x10] sm:$0xff] %v1081_v41  ;;  %v1054_v53 = vadd.f32 %v1053_v44, %v822_v31  ;;  %v1017_v54 = vpop.f32.mrf.mxu0 }
 0x1f2   :  { %v1063_v55 = vadd.f32 %v997_v43, %v1816_v32  ;;  %v1018_v56 = vadd.f32 %v1017_v54, %v1906_v22  ;;  %v1036_v58 = vpop.f32.mrf.mxu1 }
 0x1f3   :  { %v1066_v34 = vadd.f32 %v1054_v53, %v1828_v38  ;;  %v1037_v59 = vadd.f32 %v1036_v58, %v821_v14 }
 0x1f4   :  { %v1079_v60 = vmax.f32 %v1063_v55, 0.0  ;;  %v1068_v36 = vadd.f32 %v1018_v56, %v1822_v35 }
 0x1f5   :  { %v1082_v61 = vmax.f32 %v1066_v34, 0.0  ;;  %v1069_v63 = vadd.f32 %v1037_v59, %v1826_v37 }
 0x1f6   :  { %1095 = vst [vmem:[#allocation11] sm:$0xff] %v1079_v60  ;;  %v1084_v0 = vmax.f32 %v1068_v36, 0.0 }
 0x1f7   :  { %1098 = vst [vmem:[#allocation11 + $0x18] sm:$0xff] %v1082_v61  ;;  %v1085_v1 = vmax.f32 %v1069_v63, 0.0  ;;  %v998_v62 = vpop.f32.mrf.mxu3 }
 0x1f8   :  { %1100 = vst [vmem:[#allocation11 + $0x28] sm:$0xff] %v1084_v0  ;;  %v999_v5 = vadd.f32 %v998_v62, %v819_v28  ;;  %v1055_v32 = vpop.f32.mrf.mxu2 }
 0x1f9   :  { %1101 = vst [vmem:[#allocation11 + $0x30] sm:$0xff] %v1085_v1  ;;  %v1056_v2 = vadd.f32 %v1055_v32, %v822_v31 }
 0x1fa   :  { %v1067_v3 = vadd.f32 %v999_v5, %v1818_v33  ;;  %v1039_v38 = vpop.f32.mrf.mxu1 }
 0x1fb   :  { %v1070_v17 = vadd.f32 %v1056_v2, %v1830_v39  ;;  %v1040_v4 = vadd.f32 %v1039_v38, %v821_v14 }
 0x1fc   :  { %v1083_v35 = vmax.f32 %v1067_v3, 0.0 }
 0x1fd   :  { %v1086_v29 = vmax.f32 %v1070_v17, 0.0  ;;  %v1073_v37 = vadd.f32 %v1040_v4, %v1848_v49 }
 0x1fe   :  { %1099 = vst [vmem:[#allocation11 + $0x20] sm:$0xff] %v1083_v35 }
 0x1ff   :  { %1102 = vst [vmem:[#allocation11 + $0x38] sm:$0xff] %v1086_v29  ;;  %v1089_v6 = vmax.f32 %v1073_v37, 0.0  ;;  %v1001_v8 = vpop.f32.mrf.mxu3 }
 0x200   :  { %v1002_v57 = vadd.f32 %v1001_v8, %v819_v28  ;;  %v1058_v7 = vpop.f32.mrf.mxu2 }
 0x201   :  { %1105 = vst [vmem:[#allocation11 + $0x50] sm:$0xff] %v1089_v6  ;;  %v1059_v9 = vadd.f32 %v1058_v7, %v822_v31 }
 0x202   :  { %v1071_v10 = vadd.f32 %v1002_v57, %v1840_v45  ;;  %v1041_v11 = vpop.f32.mrf.mxu1 }
 0x203   :  { %v1074_v33 = vadd.f32 %v1059_v9, %v1852_v51  ;;  %v1042_v12 = vadd.f32 %v1041_v11, %v821_v14 }
 0x204   :  { %v1087_v39 = vmax.f32 %v1071_v10, 0.0 }
 0x205   :  { %v1090_v13 = vmax.f32 %v1074_v33, 0.0  ;;  %v1077_v15 = vadd.f32 %v1042_v12, %v1850_v50 }
 0x206   :  { %1103 = vst [vmem:[#allocation11 + $0x40] sm:$0xff] %v1087_v39 }
 0x207   :  { %1106 = vst [vmem:[#allocation11 + $0x58] sm:$0xff] %v1090_v13  ;;  %v1093_v49 = vmax.f32 %v1077_v15, 0.0  ;;  %v1003_v16 = vpop.f32.mrf.mxu3 }
 0x208   :  { %v1004_v18 = vadd.f32 %v1003_v16, %v819_v28  ;;  %v1060_v19 = vpop.f32.mrf.mxu2 }
 0x209   :  { %1109 = vst [vmem:[#allocation11 + $0x70] sm:$0xff] %v1093_v49  ;;  %v1061_v20 = vadd.f32 %v1060_v19, %v822_v31 }
 0x20a   :  { %v1075_v21 = vadd.f32 %v1004_v18, %v1842_v46 }
 0x20b   :  { %v1078_v45 = vadd.f32 %v1061_v20, %v1854_v52 }
 0x20c   :  { %v1091_v23 = vmax.f32 %v1075_v21, 0.0 }
 0x20d   :  { %v1094_v24 = vmax.f32 %v1078_v45, 0.0 }
 0x20e   :  { %1107 = vst [vmem:[#allocation11 + $0x60] sm:$0xff] %v1091_v23 }
 0x20f   :  { %1110 = vst [vmem:[#allocation11 + $0x78] sm:$0xff] %v1094_v24  ;;  %v1020_v51 = vpop.f32.mrf.mxu3 }
 0x210   :  { %v1021_v14 = vadd.f32 %v1020_v51, %v1906_v22 }
 0x212   :  { %v1072_v50 = vadd.f32 %v1021_v14, %v1844_v47 }
 0x214   :  { %v1088_v25 = vmax.f32 %v1072_v50, 0.0 }
 0x216   :  { %1104 = vst [vmem:[#allocation11 + $0x48] sm:$0xff] %v1088_v25 }
 0x217   :  { %v1022_v26 = vpop.f32.mrf.mxu3 }
 0x218   :  { %v1023_v27 = vadd.f32 %v1022_v26, %v1906_v22 }
 0x21a   :  { %v1076_v46 = vadd.f32 %v1023_v27, %v1846_v48 }
 0x21c   :  { %v1092_v52 = vmax.f32 %v1076_v46, 0.0 }
 0x21e   :  { %1108 = vst [vmem:[#allocation11 + $0x68] sm:$0xff] %v1092_v52 }
 0x21f   :  { %1123 = dma.vmem_to_hbm [thread:$0]  %s1116_s30, 2048, %s1118_s10, [#allocation4], %s1751_s19, %s1751_s19, %s1752_s20  }
 0x220   :  { %1744 = dma.done.wait [#allocation4], 2048  }
 0x221   :  { %1745 = vsyncadd [#allocation4], 4294965248 }
 0x222   :  { %1128 = vsyncpa [#allocation3], 1 }
 0x223   :  { %1129 = vsyncpa [#allocation6], 1 }
 0x224   :  { %1130 = vsyncpa [#allocation9], 1 }
 0x225   :  { %1131 = vsyncpa [#allocation4], 1 }

</bundles_post_ra>
